<compile_context>
chip_gen: v6e
topology: v6e:2x2x1
jax: 0.10.0
libtpu: 0.0.40
codegen_flags: <defaults>
</compile_context>

<pallas_src>
import numpy as np
import jax
import jax.numpy as jnp
from jax.experimental import pallas as pl
from jax.experimental.pallas import tpu as pltpu

# Module-level constants from src/ConvMLN.py
NUM_CONVS = 2
KERNEL = 5
NUM_FILTERS = 4
NUM_IN_CHANNELS = 1

STRIDE = 2
PAD = 1
BN_EPS = 1e-5


# ----------------------------------------------------------------------------
# Setup-time (host) precomputation: fold conv weights into dense operators.
# ----------------------------------------------------------------------------
def _conv_operator(w, hi, wi, stride, pad):
    """Fold conv weight (F, C, K, K) into a dense operator M of shape
    (C*hi*wi, F*ho*wo), columns (f, oy, ox) row-major, such that
    x.reshape(N, C*hi*wi) @ M == conv2d(x, w, stride, pad).reshape(N, F*ho*wo)."""
    w = np.asarray(w, dtype=np.float32)
    f, c, k, _ = w.shape
    ho = (hi + 2 * pad - k) // stride + 1
    wo = (wi + 2 * pad - k) // stride + 1
    m = np.zeros((c, hi, wi, f, ho, wo), np.float32)
    for kh in range(k):
        for kw in range(k):
            for oy in range(ho):
                iy = stride * oy + kh - pad
                if iy < 0 or iy >= hi:
                    continue
                for ox in range(wo):
                    ix = stride * ox + kw - pad
                    if ix < 0 or ix >= wi:
                        continue
                    m[:, iy, ix, :, oy, ox] += w[:, :, kh, kw].T  # (c, f)
    return jnp.asarray(m.reshape(c * hi * wi, f * ho * wo)), ho, wo


def _channel_bcast(f, o):
    """(F, F*O) 0/1 matrix: row f is one over that channel's O spatial columns."""
    m = np.zeros((f, f * o), np.float32)
    for i in range(f):
        m[i, i * o:(i + 1) * o] = 1.0
    return jnp.asarray(m)


def prepare_kernel_params(params, in_hw):
    """Precompute (once, outside the hot path) per-layer dense conv operators
    (bf16), channel pool/broadcast matrices (f32, exact 0/1) and packed
    per-channel BN params [gamma; beta]."""
    h, w = in_hw
    layer_ops = []
    for (cw, cb, gamma, beta) in params:
        del cb  # Conv bias is cancelled exactly by train-mode BN mean subtraction.
        f = cw.shape[0]
        wfull, oh, ow = _conv_operator(cw, h, w, STRIDE, PAD)       # (C*H*W, F*O)
        wfull = wfull.astype(jnp.bfloat16)                          # MXU-native
        bcast = _channel_bcast(f, oh * ow)                          # (F, F*O) f32
        pool = jnp.asarray(np.asarray(bcast).T)                     # (F*O, F) f32
        gb = jnp.stack([gamma, beta], axis=0).astype(jnp.float32)   # (2, F)
        layer_ops.append((wfull, pool, bcast, gb))
        h, w = oh, ow
    return tuple(layer_ops)


# ----------------------------------------------------------------------------
# Fused Pallas kernel: (conv-as-matmul + BN(train) + ReLU) x num_convs
# ----------------------------------------------------------------------------
def _layer_compute(a, wfull, pool, bcast, gb, count):
    """One layer. a: (N, Cin*Hi*Wi) f32, wfull: (Cin*Hi*Wi, F*O) bf16,
    pool: (F*O, F) f32, bcast: (F, F*O) f32, gb: (2, F) rows = [gamma, beta]."""
    gamma = gb[0:1, :]
    beta = gb[1:2, :]

    # Conv as a single bf16 MXU matmul with f32 accumulation.  No bias add:
    # train-mode BN subtracts the per-channel mean, cancelling it exactly.
    z = jnp.dot(a.astype(jnp.bfloat16), wfull,
                preferred_element_type=jnp.float32)                    # (N, F*O)

    fo = z.shape[1]
    f = gb.shape[1]
    inv = 1.0 / count

    # BatchNorm2d training-mode stats (biased var, eps=1e-5):
    # pool Sum(z) and Sum(z^2) per channel with ONE matmul (stacked (2, F*O) LHS).
    sz = jnp.sum(z, axis=0, keepdims=True)                             # (1, F*O)
    sz2 = jnp.sum(z * z, axis=0, keepdims=True)                        # (1, F*O)
    row2 = jax.lax.broadcasted_iota(jnp.int32, (2, fo), 0)
    sums = jnp.where(row2 == 0, sz, sz2)                               # (2, F*O)
    stats = jnp.dot(sums, pool, preferred_element_type=jnp.float32) * inv  # (2, F)
    mean = stats[0:1, :]
    var = jnp.maximum(stats[1:2, :] - mean * mean, 0.0)                # clamp >= 0

    # Fold BN into one per-channel affine and broadcast it with ONE matmul.
    s = gamma * jax.lax.rsqrt(var + BN_EPS)                            # (1, F)
    t = beta - mean * s                                                # (1, F)
    rowf = jax.lax.broadcasted_iota(jnp.int32, (2, f), 0)
    st = jnp.where(rowf == 0, s, t)                                    # (2, F)
    st_b = jnp.dot(st, bcast, preferred_element_type=jnp.float32)      # (2, F*O)

    return jnp.maximum(z * st_b[0:1, :] + st_b[1:2, :], 0.0)           # BN + ReLU


def _make_fused_kernel(counts):
    num_layers = len(counts)

    def kernel(*refs):
        # refs = [x_ref, (wfull, pool, bcast, gb) x num_layers, o_ref]
        x_ref = refs[0]
        o_ref = refs[-1]
        a = x_ref[...]
        for li in range(num_layers):
            w_ref, p_ref, b_ref, g_ref = refs[1 + 4 * li: 5 + 4 * li]
            a = _layer_compute(a, w_ref[...], p_ref[...], b_ref[...],
                               g_ref[...], counts[li])
        o_ref[...] = a

    return kernel


@jax.jit
def cnn_forward(x, layer_ops):
    """x: (N, C, H, W) f32; layer_ops: output of prepare_kernel_params."""
    n, c, h, w = x.shape
    a0 = x.reshape(n, c * h * w)

    counts = []
    flat_inputs = [a0]
    flops = 0
    oh, ow, f = h, w, c
    for (wfull, pool, bcast, gb) in layer_ops:
        f = gb.shape[1]
        oh = (oh + 2 * PAD - KERNEL) // STRIDE + 1
        ow = (ow + 2 * PAD - KERNEL) // STRIDE + 1
        o = oh * ow
        counts.append(n * o)
        flat_inputs.extend([wfull, pool, bcast, gb])
        flops += 2 * n * wfull.shape[0] * wfull.shape[1]   # conv matmul
        flops += 2 * 2 * (f * o) * f                       # stats pooling matmul
        flops += 2 * 2 * f * (f * o)                       # affine broadcast matmul
    out_cols = layer_ops[-1][0].shape[1]

    bytes_accessed = sum(int(v.size) * v.dtype.itemsize for v in flat_inputs)
    bytes_accessed += n * out_cols * 4

    kernel = _make_fused_kernel(tuple(counts))
    out = pl.pallas_call(
        kernel,
        out_shape=jax.ShapeDtypeStruct((n, out_cols), jnp.float32),
        in_specs=[pl.BlockSpec(memory_space=pltpu.MemorySpace.VMEM)]
                 * len(flat_inputs),
        out_specs=pl.BlockSpec(memory_space=pltpu.MemorySpace.VMEM),
        cost_estimate=pl.CostEstimate(
            flops=flops,
            transcendentals=sum(op[3].shape[1] for op in layer_ops),
            bytes_accessed=bytes_accessed),
    )(*flat_inputs)

    # Kernel output columns are (f, oy, ox) row-major -> NCHW is a free reshape.
    return out.reshape(n, f, oh, ow)


# ----------------------------------------------------------------------------
# Parameter init (mirrors the PyTorch module's shapes) and pure-JAX reference.
# ----------------------------------------------------------------------------
def init_params(key, num_convs, kernel, num_filters, num_in_channels):
    params = []
    in_ch = num_in_channels
    filt = num_filters
    for _ in range(num_convs):
        key, kw_key, kb_key = jax.random.split(key, 3)
        fan_in = in_ch * kernel * kernel
        bound = 1.0 / jnp.sqrt(fan_in)
        w = jax.random.uniform(kw_key, (filt, in_ch, kernel, kernel),
                               jnp.float32, -bound, bound)
        b = jax.random.uniform(kb_key, (filt,), jnp.float32, -bound, bound)
        gamma = jnp.ones((filt,), jnp.float32)
        beta = jnp.zeros((filt,), jnp.float32)
        params.append((w, b, gamma, beta))
        in_ch = filt
        filt = 2 * filt
    return params


def cnn_reference(x, params):
    """Pure-JAX reference: lax conv (with bias) + BN(train-mode stats) + ReLU."""
    for (w, b, gamma, beta) in params:
        z = jax.lax.conv_general_dilated(
            x, w, window_strides=(STRIDE, STRIDE),
            padding=((PAD, PAD), (PAD, PAD)),
            dimension_numbers=("NCHW", "OIHW", "NCHW"),
            precision=jax.lax.Precision.HIGHEST)
        z = z + b.reshape(1, -1, 1, 1)
        mean = jnp.mean(z, axis=(0, 2, 3), keepdims=True)
        var = jnp.mean((z - mean) ** 2, axis=(0, 2, 3), keepdims=True)
        zhat = (z - mean) * jax.lax.rsqrt(var + BN_EPS)
        x = jnp.maximum(zhat * gamma.reshape(1, -1, 1, 1)
                        + beta.reshape(1, -1, 1, 1), 0.0)
    return x


if __name__ == "__main__":
    key = jax.random.PRNGKey(0)
    key, x_key = jax.random.split(key)

    # Input consistent with the module constants: N=2, C=num_in_channels=1, 16x16.
    x = jax.random.normal(x_key, (2, NUM_IN_CHANNELS, 16, 16), jnp.float32)

    params = init_params(key, NUM_CONVS, KERNEL, NUM_FILTERS, NUM_IN_CHANNELS)
    layer_ops = prepare_kernel_params(params, (16, 16))

    y = cnn_forward(x, layer_ops)
    jax.block_until_ready(y)

    # Expected output shape for 16x16 input with two k=5,s=2,p=1 convs.
    assert y.shape == (2, NUM_FILTERS * 2, 3, 3), y.shape

    # Verify against the pure-JAX (f32, HIGHEST precision) reference.  Kernel
    # conv matmuls use bf16 inputs with f32 accumulation, so use a
    # bf16-appropriate tolerance.
    y_ref = cnn_reference(x, params)
    np.testing.assert_allclose(np.asarray(y), np.asarray(y_ref),
                               rtol=2e-2, atol=2e-2)

    # TODO(synk): BatchNorm running-stats update is a training-time side effect and
    # does not affect the forward output, so it is intentionally not emitted.
    print("KERNEL_OK")
</pallas_src>

<mosaic_0001>
module attributes {stable_mosaic.version = 11 : i64} {
  func.func @kernel(%arg0: memref<2x256xf32, #tpu.memory_space<vmem>>, %arg1: memref<256x196xbf16, #tpu.memory_space<vmem>>, %arg2: memref<196x4xf32, #tpu.memory_space<vmem>>, %arg3: memref<4x196xf32, #tpu.memory_space<vmem>>, %arg4: memref<2x4xf32, #tpu.memory_space<vmem>>, %arg5: memref<196x72xbf16, #tpu.memory_space<vmem>>, %arg6: memref<72x8xf32, #tpu.memory_space<vmem>>, %arg7: memref<8x72xf32, #tpu.memory_space<vmem>>, %arg8: memref<2x8xf32, #tpu.memory_space<vmem>>, %arg9: memref<2x72xf32, #tpu.memory_space<vmem>>) attributes {dimension_semantics = [], scalar_prefetch = 0 : i64, scratch_operands = 0 : i64, tpu.core_type = #tpu.core_type<tc>} {
    %c0 = arith.constant 0 : index
    %c0_0 = arith.constant 0 : index
    %0 = vector.load %arg0[%c0, %c0_0] : memref<2x256xf32, #tpu.memory_space<vmem>>, vector<2x256xf32>
    %c0_1 = arith.constant 0 : index
    %c0_2 = arith.constant 0 : index
    %1 = vector.load %arg1[%c0_1, %c0_2] : memref<256x196xbf16, #tpu.memory_space<vmem>>, vector<256x196xbf16>
    %c0_3 = arith.constant 0 : index
    %c0_4 = arith.constant 0 : index
    %2 = vector.load %arg2[%c0_3, %c0_4] : memref<196x4xf32, #tpu.memory_space<vmem>>, vector<196x4xf32>
    %c0_5 = arith.constant 0 : index
    %c0_6 = arith.constant 0 : index
    %3 = vector.load %arg3[%c0_5, %c0_6] : memref<4x196xf32, #tpu.memory_space<vmem>>, vector<4x196xf32>
    %c0_7 = arith.constant 0 : index
    %c0_8 = arith.constant 0 : index
    %4 = vector.load %arg4[%c0_7, %c0_8] : memref<2x4xf32, #tpu.memory_space<vmem>>, vector<2x4xf32>
    %5 = vector.extract_strided_slice %4 {offsets = [0, 0], sizes = [1, 4], strides = [1, 1]} : vector<2x4xf32> to vector<1x4xf32>
    %6 = vector.extract_strided_slice %4 {offsets = [1, 0], sizes = [1, 4], strides = [1, 1]} : vector<2x4xf32> to vector<1x4xf32>
    %7 = arith.truncf %0 : vector<2x256xf32> to vector<2x256xbf16>
    %cst = arith.constant dense<0.000000e+00> : vector<2x196xf32>
    %8 = tpu.matmul %7, %1, %cst {dimension_numbers = #tpu.dot_dimension_numbers<[1], [0], [0], [1], [0, 0, 1, 1], [], []>} : vector<2x256xbf16>, vector<256x196xbf16>, vector<2x196xf32> -> vector<2x196xf32>
    %cst_9 = arith.constant dense<0.000000e+00> : vector<196xf32>
    %9 = vector.multi_reduction <add>, %8, %cst_9 [0] : vector<2x196xf32> to vector<196xf32>
    %10 = vector.shape_cast %9 : vector<196xf32> to vector<1x196xf32>
    %11 = arith.mulf %8, %8 : vector<2x196xf32>
    %cst_10 = arith.constant dense<0.000000e+00> : vector<196xf32>
    %12 = vector.multi_reduction <add>, %11, %cst_10 [0] : vector<2x196xf32> to vector<196xf32>
    %13 = vector.shape_cast %12 : vector<196xf32> to vector<1x196xf32>
    %14 = tpu.iota {dimensions = array<i32: 0>} : vector<2x196xi32>
    %c0_i32 = arith.constant 0 : i32
    %15 = vector.broadcast %c0_i32 : i32 to vector<2x196xi32>
    %16 = arith.cmpi eq, %14, %15 : vector<2x196xi32>
    %17 = vector.shape_cast %10 : vector<1x196xf32> to vector<1x196xf32>
    %18 = vector.broadcast %17 : vector<1x196xf32> to vector<2x196xf32>
    %19 = vector.shape_cast %13 : vector<1x196xf32> to vector<1x196xf32>
    %20 = vector.broadcast %19 : vector<1x196xf32> to vector<2x196xf32>
    %21 = arith.select %16, %18, %20 : vector<2x196xi1>, vector<2x196xf32>
    %cst_11 = arith.constant dense<0.000000e+00> : vector<2x4xf32>
    %22 = tpu.matmul %21, %2, %cst_11 {dimension_numbers = #tpu.dot_dimension_numbers<[1], [0], [0], [1], [0, 0, 1, 1], [], []>} : vector<2x196xf32>, vector<196x4xf32>, vector<2x4xf32> -> vector<2x4xf32>
    %cst_12 = arith.constant 0.0102040814 : f32
    %23 = vector.broadcast %cst_12 : f32 to vector<2x4xf32>
    %24 = arith.mulf %22, %23 : vector<2x4xf32>
    %25 = vector.extract_strided_slice %24 {offsets = [0, 0], sizes = [1, 4], strides = [1, 1]} : vector<2x4xf32> to vector<1x4xf32>
    %26 = vector.extract_strided_slice %24 {offsets = [1, 0], sizes = [1, 4], strides = [1, 1]} : vector<2x4xf32> to vector<1x4xf32>
    %27 = arith.mulf %25, %25 : vector<1x4xf32>
    %28 = arith.subf %26, %27 : vector<1x4xf32>
    %cst_13 = arith.constant 0.000000e+00 : f32
    %29 = vector.broadcast %cst_13 : f32 to vector<1x4xf32>
    %30 = arith.maximumf %28, %29 : vector<1x4xf32>
    %cst_14 = arith.constant 9.99999974E-6 : f32
    %31 = vector.broadcast %cst_14 : f32 to vector<1x4xf32>
    %32 = arith.addf %30, %31 : vector<1x4xf32>
    %33 = math.rsqrt %32 : vector<1x4xf32>
    %34 = arith.mulf %5, %33 : vector<1x4xf32>
    %35 = arith.mulf %25, %34 : vector<1x4xf32>
    %36 = arith.subf %6, %35 : vector<1x4xf32>
    %37 = tpu.iota {dimensions = array<i32: 0>} : vector<2x4xi32>
    %c0_i32_15 = arith.constant 0 : i32
    %38 = vector.broadcast %c0_i32_15 : i32 to vector<2x4xi32>
    %39 = arith.cmpi eq, %37, %38 : vector<2x4xi32>
    %40 = vector.shape_cast %34 : vector<1x4xf32> to vector<1x4xf32>
    %41 = vector.broadcast %40 : vector<1x4xf32> to vector<2x4xf32>
    %42 = vector.shape_cast %36 : vector<1x4xf32> to vector<1x4xf32>
    %43 = vector.broadcast %42 : vector<1x4xf32> to vector<2x4xf32>
    %44 = arith.select %39, %41, %43 : vector<2x4xi1>, vector<2x4xf32>
    %cst_16 = arith.constant dense<0.000000e+00> : vector<2x196xf32>
    %45 = tpu.matmul %44, %3, %cst_16 {dimension_numbers = #tpu.dot_dimension_numbers<[1], [0], [0], [1], [0, 0, 1, 1], [], []>} : vector<2x4xf32>, vector<4x196xf32>, vector<2x196xf32> -> vector<2x196xf32>
    %46 = vector.extract_strided_slice %45 {offsets = [0, 0], sizes = [1, 196], strides = [1, 1]} : vector<2x196xf32> to vector<1x196xf32>
    %47 = vector.broadcast %46 : vector<1x196xf32> to vector<2x196xf32>
    %48 = arith.mulf %8, %47 : vector<2x196xf32>
    %49 = vector.extract_strided_slice %45 {offsets = [1, 0], sizes = [1, 196], strides = [1, 1]} : vector<2x196xf32> to vector<1x196xf32>
    %50 = vector.broadcast %49 : vector<1x196xf32> to vector<2x196xf32>
    %51 = arith.addf %48, %50 : vector<2x196xf32>
    %cst_17 = arith.constant 0.000000e+00 : f32
    %52 = vector.broadcast %cst_17 : f32 to vector<2x196xf32>
    %53 = arith.maximumf %51, %52 : vector<2x196xf32>
    %c0_18 = arith.constant 0 : index
    %c0_19 = arith.constant 0 : index
    %54 = vector.load %arg5[%c0_18, %c0_19] : memref<196x72xbf16, #tpu.memory_space<vmem>>, vector<196x72xbf16>
    %c0_20 = arith.constant 0 : index
    %c0_21 = arith.constant 0 : index
    %55 = vector.load %arg6[%c0_20, %c0_21] : memref<72x8xf32, #tpu.memory_space<vmem>>, vector<72x8xf32>
    %c0_22 = arith.constant 0 : index
    %c0_23 = arith.constant 0 : index
    %56 = vector.load %arg7[%c0_22, %c0_23] : memref<8x72xf32, #tpu.memory_space<vmem>>, vector<8x72xf32>
    %c0_24 = arith.constant 0 : index
    %c0_25 = arith.constant 0 : index
    %57 = vector.load %arg8[%c0_24, %c0_25] : memref<2x8xf32, #tpu.memory_space<vmem>>, vector<2x8xf32>
    %58 = vector.extract_strided_slice %57 {offsets = [0, 0], sizes = [1, 8], strides = [1, 1]} : vector<2x8xf32> to vector<1x8xf32>
    %59 = vector.extract_strided_slice %57 {offsets = [1, 0], sizes = [1, 8], strides = [1, 1]} : vector<2x8xf32> to vector<1x8xf32>
    %60 = arith.truncf %53 : vector<2x196xf32> to vector<2x196xbf16>
    %cst_26 = arith.constant dense<0.000000e+00> : vector<2x72xf32>
    %61 = tpu.matmul %60, %54, %cst_26 {dimension_numbers = #tpu.dot_dimension_numbers<[1], [0], [0], [1], [0, 0, 1, 1], [], []>} : vector<2x196xbf16>, vector<196x72xbf16>, vector<2x72xf32> -> vector<2x72xf32>
    %cst_27 = arith.constant dense<0.000000e+00> : vector<72xf32>
    %62 = vector.multi_reduction <add>, %61, %cst_27 [0] : vector<2x72xf32> to vector<72xf32>
    %63 = vector.shape_cast %62 : vector<72xf32> to vector<1x72xf32>
    %64 = arith.mulf %61, %61 : vector<2x72xf32>
    %cst_28 = arith.constant dense<0.000000e+00> : vector<72xf32>
    %65 = vector.multi_reduction <add>, %64, %cst_28 [0] : vector<2x72xf32> to vector<72xf32>
    %66 = vector.shape_cast %65 : vector<72xf32> to vector<1x72xf32>
    %67 = tpu.iota {dimensions = array<i32: 0>} : vector<2x72xi32>
    %c0_i32_29 = arith.constant 0 : i32
    %68 = vector.broadcast %c0_i32_29 : i32 to vector<2x72xi32>
    %69 = arith.cmpi eq, %67, %68 : vector<2x72xi32>
    %70 = vector.shape_cast %63 : vector<1x72xf32> to vector<1x72xf32>
    %71 = vector.broadcast %70 : vector<1x72xf32> to vector<2x72xf32>
    %72 = vector.shape_cast %66 : vector<1x72xf32> to vector<1x72xf32>
    %73 = vector.broadcast %72 : vector<1x72xf32> to vector<2x72xf32>
    %74 = arith.select %69, %71, %73 : vector<2x72xi1>, vector<2x72xf32>
    %cst_30 = arith.constant dense<0.000000e+00> : vector<2x8xf32>
    %75 = tpu.matmul %74, %55, %cst_30 {dimension_numbers = #tpu.dot_dimension_numbers<[1], [0], [0], [1], [0, 0, 1, 1], [], []>} : vector<2x72xf32>, vector<72x8xf32>, vector<2x8xf32> -> vector<2x8xf32>
    %cst_31 = arith.constant 0.055555556 : f32
    %76 = vector.broadcast %cst_31 : f32 to vector<2x8xf32>
    %77 = arith.mulf %75, %76 : vector<2x8xf32>
    %78 = vector.extract_strided_slice %77 {offsets = [0, 0], sizes = [1, 8], strides = [1, 1]} : vector<2x8xf32> to vector<1x8xf32>
    %79 = vector.extract_strided_slice %77 {offsets = [1, 0], sizes = [1, 8], strides = [1, 1]} : vector<2x8xf32> to vector<1x8xf32>
    %80 = arith.mulf %78, %78 : vector<1x8xf32>
    %81 = arith.subf %79, %80 : vector<1x8xf32>
    %cst_32 = arith.constant 0.000000e+00 : f32
    %82 = vector.broadcast %cst_32 : f32 to vector<1x8xf32>
    %83 = arith.maximumf %81, %82 : vector<1x8xf32>
    %cst_33 = arith.constant 9.99999974E-6 : f32
    %84 = vector.broadcast %cst_33 : f32 to vector<1x8xf32>
    %85 = arith.addf %83, %84 : vector<1x8xf32>
    %86 = math.rsqrt %85 : vector<1x8xf32>
    %87 = arith.mulf %58, %86 : vector<1x8xf32>
    %88 = arith.mulf %78, %87 : vector<1x8xf32>
    %89 = arith.subf %59, %88 : vector<1x8xf32>
    %90 = tpu.iota {dimensions = array<i32: 0>} : vector<2x8xi32>
    %c0_i32_34 = arith.constant 0 : i32
    %91 = vector.broadcast %c0_i32_34 : i32 to vector<2x8xi32>
    %92 = arith.cmpi eq, %90, %91 : vector<2x8xi32>
    %93 = vector.shape_cast %87 : vector<1x8xf32> to vector<1x8xf32>
    %94 = vector.broadcast %93 : vector<1x8xf32> to vector<2x8xf32>
    %95 = vector.shape_cast %89 : vector<1x8xf32> to vector<1x8xf32>
    %96 = vector.broadcast %95 : vector<1x8xf32> to vector<2x8xf32>
    %97 = arith.select %92, %94, %96 : vector<2x8xi1>, vector<2x8xf32>
    %cst_35 = arith.constant dense<0.000000e+00> : vector<2x72xf32>
    %98 = tpu.matmul %97, %56, %cst_35 {dimension_numbers = #tpu.dot_dimension_numbers<[1], [0], [0], [1], [0, 0, 1, 1], [], []>} : vector<2x8xf32>, vector<8x72xf32>, vector<2x72xf32> -> vector<2x72xf32>
    %99 = vector.extract_strided_slice %98 {offsets = [0, 0], sizes = [1, 72], strides = [1, 1]} : vector<2x72xf32> to vector<1x72xf32>
    %100 = vector.broadcast %99 : vector<1x72xf32> to vector<2x72xf32>
    %101 = arith.mulf %61, %100 : vector<2x72xf32>
    %102 = vector.extract_strided_slice %98 {offsets = [1, 0], sizes = [1, 72], strides = [1, 1]} : vector<2x72xf32> to vector<1x72xf32>
    %103 = vector.broadcast %102 : vector<1x72xf32> to vector<2x72xf32>
    %104 = arith.addf %101, %103 : vector<2x72xf32>
    %cst_36 = arith.constant 0.000000e+00 : f32
    %105 = vector.broadcast %cst_36 : f32 to vector<2x72xf32>
    %106 = arith.maximumf %104, %105 : vector<2x72xf32>
    %c0_37 = arith.constant 0 : index
    %c0_38 = arith.constant 0 : index
    %107 = vector.load %arg9[%c0_37, %c0_38] : memref<2x72xf32, #tpu.memory_space<vmem>>, vector<2x72xf32>
    tpu.vector_store %arg9[%c0_37, %c0_38], %106 {strides = array<i32>} : memref<2x72xf32, #tpu.memory_space<vmem>>, vector<2x72xf32>,
    return
  }
}

</mosaic_0001>

<bundles_post_ra>
// kernel: cnn_forward.1
= control target key start
LH: loop header
LB: loop body
LE: loop exit
PB: predicated region body
PF: predicated region fallthrough
CT: control target
= control target key end

     0   :  { %v1080_v1 = vmov 0.0   ;;  %vm348_vm0 = vcmask 1043456   ;;  %vm307_vm1 = vcmask 1041408   ;;  %vm315_vm2 = vcmask 549888   ;;  %s1486_s1 = inlined_call_operand.vmem [shape: bf16[256,196], index: 1, kind: input, shape index: {}]   ;;  %s1487_s0 = inlined_call_operand.vmem [shape: f32[2,256], index: 0, kind: input, shape index: {}]   ;;  %s1488_s2 = inlined_call_operand.vmem [shape: f32[196,4], index: 2, kind: input, shape index: {}]   ;;  %s1489_s3 = inlined_call_operand.vmem [shape: f32[4,196], index: 3, kind: input, shape index: {}]   ;;  %s1490_s5 = inlined_call_operand.vmem [shape: bf16[196,72], index: 5, kind: input, shape index: {}]   ;;  %s1491_s4 = inlined_call_operand.vmem [shape: f32[2,4], index: 4, kind: input, shape index: {}]   ;;  %s1492_s6 = inlined_call_operand.vmem [shape: f32[72,8], index: 6, kind: input, shape index: {}]   ;;  %s1493_s7 = inlined_call_operand.vmem [shape: f32[8,72], index: 7, kind: input, shape index: {}]   ;;  %s1494_s8 = inlined_call_operand.vmem [shape: f32[2,8], index: 8, kind: input, shape index: {}]   ;;  %s1495_s9 = inlined_call_operand.vmem [shape: f32[2,72], index: 9, kind: output, shape index: {}]  }
   0x1   :  { %v1014_v0 = vld [vmem:[%s1486_s1 + $0x74] ss:$8 sps:$4 sm:$0xff]   ;;  %352 = vmatprep.subr.mxu1 %v1080_v1  ;;  %v1016_v2 = vld [vmem:[%s1486_s1 + $0x70] ss:$8 sps:$4 sm:$0xff]   ;;  %v1017_v3 = vld [vmem:[%s1486_s1 + $0x64] ss:$8 sps:$4 sm:$0xff]  }
   0x2   :  { %266 = vmatprep.subr.bf16.mxu0 %v1014_v0  ;;  %v1019_v4 = vld [vmem:[%s1486_s1 + $0x60] ss:$8 sps:$4 sm:$0xff]   ;;  %v1020_v5 = vld [vmem:[%s1486_s1 + $0x54] ss:$8 sps:$4 sm:$0xff]   ;;  %v1022_v6 = vld [vmem:[%s1486_s1 + $0x50] ss:$8 sps:$4 sm:$0xff]  }
   0x3   :  { %267 = vmatpush1.bf16.msra.mxu0 %v1016_v2  ;;  %v1023_v7 = vld [vmem:[%s1486_s1 + $0x44] ss:$8 sps:$4 sm:$0xff]   ;;  %v1025_v8 = vld [vmem:[%s1486_s1 + $0x40] ss:$8 sps:$4 sm:$0xff]   ;;  %v1026_v9 = vld [vmem:[%s1486_s1 + $0x34] ss:$8 sps:$4 sm:$0xff]  }
   0x4   :  { %268 = vmatprep.subr.bf16.mxu0 %v1017_v3  ;;  %v1028_v10 = vld [vmem:[%s1486_s1 + $0x30] ss:$8 sps:$4 sm:$0xff]   ;;  %v1029_v11 = vld [vmem:[%s1486_s1 + $0x24] ss:$8 sps:$4 sm:$0xff]   ;;  %v1031_v12 = vld [vmem:[%s1486_s1 + $0x20] ss:$8 sps:$4 sm:$0xff]  }
   0x5   :  { %v1032_v13 = vld [vmem:[%s1486_s1 + $0x14] ss:$8 sps:$4 sm:$0xff]   ;;  %v1176_v14 = vld.sshfl [vmem:[%s1487_s0] sm:$0x33 pattern:$0x76325410] }
   0x6   :  { %v101_v15 = vcombine.high %v1176_v14, %v1176_v14  ;;  %v81_v16 = vld [vmem:[%s1488_s2 + $0x78] sm:$0xff]  ;;  %v80_v17 = vld [vmem:[%s1488_s2 + $0x70] sm:$0xff]  ;;  %v1035_v19 = vld [vmem:[%s1486_s1 + $0x4] ss:$8 sps:$4 sm:$0xff]   ;;  %v104_v51 = vpack.c.bf16 %v1176_v14, %v1176_v14  ;;  %vm344_vm4 = vcmask 556032   ;;  %vm451_vm5 = vcmask 31744  }
   0x7   :  { %269 = vmatpush1.bf16.msra.mxu0 %v1019_v4  ;;  %v1034_v18 = vld [vmem:[%s1486_s1 + $0x10] ss:$8 sps:$4 sm:$0xff]   ;;  %353 = vmatpush1.msra.mxu1 %v81_v16  ;;  %v79_v21 = vld [vmem:[%s1488_s2 + $0x68] sm:$0xff]  ;;  %v78_v22 = vld [vmem:[%s1488_s2 + $0x60] sm:$0xff]  ;;  %vm1082_vm6 = vmmov 0   ;;  %vm711_vm7 = vcmask 582656  }
   0x8   :  { %270 = vmatprep.subr.bf16.mxu0 %v1020_v5  ;;  %v105_v20 = vpack.c.bf16 %v101_v15, %v101_v15  ;;  %354 = vmatprep.subr.mxu1 %v1080_v1  ;;  %v1037_v23 = vld [vmem:[%s1486_s1] ss:$8 sps:$4 sm:$0xff]   ;;  %v1038_v24 = vld [vmem:[%s1486_s1 + $0xf4] ss:$8 sps:$4 sm:$0xff]   ;;  %v1040_v27 = vld [vmem:[%s1486_s1 + $0xf0] ss:$8 sps:$4 sm:$0xff]  }
   0x9   :  { %355 = vmatpush1.msra.mxu1 %v80_v17  ;;  %v77_v25 = vld [vmem:[%s1488_s2 + $0x58] sm:$0xff]  ;;  %v76_v26 = vld [vmem:[%s1488_s2 + $0x50] sm:$0xff]  ;;  %v1041_v28 = vld [vmem:[%s1486_s1 + $0xe4] ss:$8 sps:$4 sm:$0xff]   ;;  %vm728_vm8 = vcmask 588800   ;;  %vm829_vm9 = vcmask 64512  }
   0xa   :  { %298 = vmatprep.mubr.bf16.mxu0 %v105_v20  ;;  %356 = vmatprep.subr.mxu1 %v1080_v1  ;;  %v75_v29 = vld [vmem:[%s1488_s2 + $0x48] sm:$0xff]  ;;  %v74_v30 = vld [vmem:[%s1488_s2 + $0x40] sm:$0xff]  ;;  %v1044_v32 = vld [vmem:[%s1486_s1 + $0xd4] ss:$8 sps:$4 sm:$0xff]   ;;  %v339_v20 = vlaneseq }
   0xb   :  { %271 = vmatpush1.bf16.msra.mxu0 %v1022_v6  ;;  %357 = vmatpush1.msra.mxu1 %v79_v21  ;;  %v1043_v31 = vld [vmem:[%s1486_s1 + $0xe0] ss:$8 sps:$4 sm:$0xff]   ;;  %v73_v33 = vld [vmem:[%s1488_s2 + $0x38] sm:$0xff]  ;;  %v72_v34 = vld [vmem:[%s1488_s2 + $0x30] sm:$0xff] }
   0xc   :  { %272 = vmatprep.subr.bf16.mxu0 %v1023_v7  ;;  %358 = vmatprep.subr.mxu1 %v1080_v1  ;;  %v1046_v35 = vld [vmem:[%s1486_s1 + $0xd0] ss:$8 sps:$4 sm:$0xff]   ;;  %v1047_v36 = vld [vmem:[%s1486_s1 + $0xc4] ss:$8 sps:$4 sm:$0xff]   ;;  %v1049_v39 = vld [vmem:[%s1486_s1 + $0xc0] ss:$8 sps:$4 sm:$0xff]  }
   0xd   :  { %359 = vmatpush1.msra.mxu1 %v78_v22  ;;  %v71_v37 = vld [vmem:[%s1488_s2 + $0x28] sm:$0xff]  ;;  %v70_v38 = vld [vmem:[%s1488_s2 + $0x20] sm:$0xff]  ;;  %v1050_v40 = vld [vmem:[%s1486_s1 + $0xb4] ss:$8 sps:$4 sm:$0xff]  }
   0xe   :  { %360 = vmatprep.subr.mxu1 %v1080_v1  ;;  %v69_v41 = vld [vmem:[%s1488_s2 + $0x18] sm:$0xff]  ;;  %v68_v42 = vld [vmem:[%s1488_s2 + $0x10] sm:$0xff]  ;;  %v1053_v44 = vld [vmem:[%s1486_s1 + $0xa4] ss:$8 sps:$4 sm:$0xff]  }
   0xf   :  { %273 = vmatpush1.bf16.msra.mxu0 %v1025_v8  ;;  %361 = vmatpush1.msra.mxu1 %v77_v25  ;;  %v1052_v43 = vld [vmem:[%s1486_s1 + $0xb0] ss:$8 sps:$4 sm:$0xff]   ;;  %v67_v45 = vld [vmem:[%s1488_s2 + $0x8] sm:$0xff]  ;;  %v1056_v47 = vld [vmem:[%s1486_s1 + $0x94] ss:$8 sps:$4 sm:$0xff]  }
  0x10   :  { %274 = vmatprep.subr.bf16.mxu0 %v1026_v9  ;;  %362 = vmatprep.subr.mxu1 %v1080_v1  ;;  %v1055_v46 = vld [vmem:[%s1486_s1 + $0xa0] ss:$8 sps:$4 sm:$0xff]   ;;  %v1058_v48 = vld [vmem:[%s1486_s1 + $0x90] ss:$8 sps:$4 sm:$0xff]   ;;  %v1059_v49 = vld [vmem:[%s1486_s1 + $0x84] ss:$8 sps:$4 sm:$0xff]  }
  0x11   :  { %363 = vmatpush1.msra.mxu1 %v76_v26  ;;  %v1061_v50 = vld [vmem:[%s1486_s1 + $0x80] ss:$8 sps:$4 sm:$0xff]   ;;  %v89_v54 = vld [vmem:[%s1488_s2 + $0xb8] sm:$0xff]  ;;  %v88_v55 = vld [vmem:[%s1488_s2 + $0xb0] sm:$0xff] }
  0x12   :  { %364 = vmatprep.subr.mxu1 %v1080_v1  ;;  %v66_v52 = vld [vmem:[%s1488_s2] sm:$0xff]  ;;  %v87_v56 = vld [vmem:[%s1488_s2 + $0xa8] sm:$0xff]  ;;  %v85_v58 = vld [vmem:[%s1488_s2 + $0x98] sm:$0xff] }
  0x13   :  { %275 = vmatpush1.bf16.msra.mxu0 %v1028_v10  ;;  %365 = vmatpush1.msra.mxu1 %v75_v29  ;;  %v90_v53 = vld [vmem:[%s1488_s2 + $0xc0] sm:$0xf]  ;;  %v84_v59 = vld [vmem:[%s1488_s2 + $0x90] sm:$0xff]  ;;  %v83_v60 = vld [vmem:[%s1488_s2 + $0x88] sm:$0xff] }
  0x14   :  { %276 = vmatprep.subr.bf16.mxu0 %v1029_v11  ;;  %366 = vmatprep.subr.mxu1 %v1080_v1  ;;  %v86_v57 = vld [vmem:[%s1488_s2 + $0xa0] sm:$0xff] }
  0x15   :  { %367 = vmatpush1.msra.mxu1 %v74_v30  ;;  %v82_v61 = vld [vmem:[%s1488_s2 + $0x80] sm:$0xff] }
  0x16   :  { %368 = vmatprep.subr.mxu1 %v1080_v1 }
  0x17   :  { %277 = vmatpush1.bf16.msra.mxu0 %v1031_v12  ;;  %369 = vmatpush1.msra.mxu1 %v73_v33 }
  0x18   :  { %278 = vmatprep.subr.bf16.mxu0 %v1032_v13  ;;  %370 = vmatprep.subr.mxu1 %v1080_v1 }
  0x19   :  { %371 = vmatpush1.msra.mxu1 %v72_v34 }
  0x1a   :  { %372 = vmatprep.subr.mxu1 %v1080_v1 }
  0x1b   :  { %279 = vmatpush1.bf16.msra.mxu0 %v1034_v18  ;;  %373 = vmatpush1.msra.mxu1 %v71_v37  ;;  %v91_v37 = vld [vmem:[%s1489_s3] sm:$0xff] }
  0x1c   :  { %280 = vmatprep.subr.bf16.mxu0 %v1035_v19  ;;  %374 = vmatprep.subr.mxu1 %v1080_v1 }
  0x1d   :  { %375 = vmatpush1.msra.mxu1 %v70_v38  ;;  %v450_v38 = vcombine.high %v91_v37, %v91_v37 }
  0x1e   :  { %376 = vmatprep.subr.mxu1 %v1080_v1 }
  0x1f   :  { %281 = vmatpush1.bf16.msra.mxu0 %v1037_v23  ;;  %377 = vmatpush1.msra.mxu1 %v69_v41  ;;  %v1064_v41 = vld [vmem:[%s1490_s5 + $0x30] sm:$0xff]  }
  0x20   :  { %282 = vmatprep.subr.bf16.mxu0 %v1038_v24  ;;  %378 = vmatprep.subr.mxu1 %v1080_v1 }
  0x21   :  { %379 = vmatpush1.msra.mxu1 %v68_v42  ;;  %v1065_v42 = vld [vmem:[%s1490_s5 + $0x28] sm:$0xff]  }
  0x22   :  { %380 = vmatprep.subr.mxu1 %v1080_v1 }
  0x23   :  { %283 = vmatpush2.bf16.msra.mxu0 %v1040_v27  ;;  %381 = vmatpush1.msra.mxu1 %v67_v45  ;;  %v1352_v27 = vshrl.u32 %v339_v20, 7  ;;  %v1068_v45 = vld [vmem:[%s1490_s5 + $0x10] sm:$0xff]  }
  0x24   :  { %284 = vmatprep.subr.bf16.mxu0 %v1041_v28  ;;  %382 = vmatprep.subr.mxu1 %v1080_v1 }
  0x25   :  { %383 = vmatpush1.msra.mxu1 %v66_v52  ;;  %vm341_vm3 = vcmp.eq.s32.totalorder %v1352_v27, 0 }
  0x26   :  { %398 = vmatprep.subr.mxu1 %v1080_v1 }
  0x27   :  { %285 = vmatpush2.bf16.msra.mxu0 %v1043_v31  ;;  %952 = vmatpush2.msk.msra.mxu1 %vm348_vm0, %v90_v53 }
  0x28   :  { %286 = vmatprep.subr.bf16.mxu0 %v1044_v32  ;;  %400 = vmatprep.subr.mxu1 %v1080_v1 }
  0x29   :  { %401 = vmatpush2.msra.mxu1 %v89_v54 }
  0x2a   :  { %402 = vmatprep.subr.mxu1 %v1080_v1 }
  0x2b   :  { %287 = vmatpush2.bf16.msra.mxu0 %v1046_v35  ;;  %403 = vmatpush2.msra.mxu1 %v88_v55 }
  0x2c   :  { %288 = vmatprep.subr.bf16.mxu0 %v1047_v36  ;;  %404 = vmatprep.subr.mxu1 %v1080_v1 }
  0x2d   :  { %405 = vmatpush2.msra.mxu1 %v87_v56 }
  0x2e   :  { %406 = vmatprep.subr.mxu1 %v1080_v1 }
  0x2f   :  { %289 = vmatpush2.bf16.msra.mxu0 %v1049_v39  ;;  %407 = vmatpush2.msra.mxu1 %v86_v57  ;;  %v1081_v39 = vmov 0  }
  0x30   :  { %290 = vmatprep.subr.bf16.mxu0 %v1050_v40  ;;  %408 = vmatprep.subr.mxu1 %v1080_v1  ;;  %v1063_v40 = vld [vmem:[%s1490_s5 + $0x38] sm:$0xff]  }
  0x31   :  { %409 = vmatpush2.msra.mxu1 %v85_v58 }
  0x32   :  { %410 = vmatprep.subr.mxu1 %v1080_v1 }
  0x33   :  { %291 = vmatpush2.bf16.msra.mxu0 %v1052_v43  ;;  %411 = vmatpush2.msra.mxu1 %v84_v59  ;;  %v1066_v43 = vld [vmem:[%s1490_s5 + $0x20] sm:$0xff]  }
  0x34   :  { %292 = vmatprep.subr.bf16.mxu0 %v1053_v44  ;;  %412 = vmatprep.subr.mxu1 %v1080_v1  ;;  %v1067_v44 = vld [vmem:[%s1490_s5 + $0x18] sm:$0xff]  }
  0x35   :  { %413 = vmatpush2.msra.mxu1 %v83_v60  ;;  %v92_v60 = vld [vmem:[%s1491_s4] sm:$0x3] }
  0x36   :  { %414 = vmatprep.subr.mxu1 %v1080_v1 }
  0x37   :  { %293 = vmatpush2.bf16.msra.mxu0 %v1055_v46  ;;  %415 = vmatpush2.msra.mxu1 %v82_v61  ;;  %v1069_v46 = vld [vmem:[%s1490_s5 + $0x8] sm:$0xff]  }
  0x38   :  { %294 = vmatprep.subr.bf16.mxu0 %v1056_v47  ;;  %671 = vmatprep.subr.bf16.mxu1 %v1081_v39  ;;  %v1070_v47 = vld [vmem:[%s1490_s5] sm:$0xff]  }
  0x3b   :  { %295 = vmatpush2.bf16.msra.mxu0 %v1058_v48  ;;  %v1071_v48 = vld [vmem:[%s1490_s5 + $0x60] ss:$0 sps:$4 sm:$0x33]  }
  0x3c   :  { %296 = vmatprep.subr.bf16.mxu0 %v1059_v49  ;;  %v669_v49 = vsel %vm307_vm1, %v1071_v48, 0 }
  0x3f   :  { %297 = vmatpush2.bf16.msra.mxu0 %v1061_v50  ;;  %v1072_v50 = vld [vmem:[%s1490_s5 + $0x58] sm:$0xff]  }
  0x40   :  { %954 = vmatprep.subr.msk.mxu0 %vm348_vm0, %v450_v38 }
  0x42   :  { %299 = vmatmul.mubr.bf16.vlgmr.msra.gmra.mxu0 %v104_v51 }
  0x43   :  { %523 = vmatprep.mubr.f32.mxu0 %v1080_v1  ;;  %955 = vmatpush1.msk.msra.mxu0 %vm348_vm0, %v91_v37 }
  0x44   :  { %985 = vmatprep.subr.mxu0 %v1080_v1 }
 0x102   :  { %v1340_v62 = vpop.f32.mrf.mxu0 }
 0x103   :  { %v308_v63 = vsel %vm307_vm1, %v1340_v62, 0.0  ;;  %v323_v0 = vmul.f32 %v1340_v62, %v1340_v62 }
 0x104   :  { %v309_v2 = vrot.slane %v308_v63, 4  ;;  %v1346_v3 = vpop.f32.mrf.mxu0 }
 0x105   :  { %v325_v4 = vsel %vm307_vm1, %v323_v0, 0.0  ;;  %v316_v5 = vsel %vm315_vm2, %v1346_v3, 0.0  ;;  %v324_v6 = vmul.f32 %v1346_v3, %v1346_v3 }
 0x106   :  { %v310_v7 = vadd.f32 %v309_v2, %v308_v63  ;;  %v326_v8 = vrot.slane %v325_v4, 4  ;;  %v317_v9 = vrot.slane %v316_v5, 4  ;;  %v304_v10 = vpop.f32.mrf.mxu0  ;;  %v1401_v2 = vsub.s32 0, %v1352_v27 }
 0x107   :  { %v332_v11 = vsel %vm315_vm2, %v324_v6, 0.0  ;;  %v1073_v10 = vld [vmem:[%s1490_s5 + $0x50] sm:$0xff]  }
 0x108   :  { %v311_v12 = vrot.slane %v310_v7, 2  ;;  %v327_v13 = vadd.f32 %v326_v8, %v325_v4  ;;  %v318_v14 = vadd.f32 %v317_v9, %v316_v5  ;;  %v333_v15 = vrot.slane %v332_v11, 4  ;;  %v305_v16 = vpop.f32.mrf.mxu0 }
 0x109   :  { %v1404_v4 = vsub.s32 1, %v1352_v27 }
 0x10a   :  { %v328_v17 = vrot.slane %v327_v13, 2  ;;  %v319_v18 = vrot.slane %v318_v14, 2  ;;  %v334_v19 = vadd.f32 %v333_v15, %v332_v11  ;;  %v312_v21 = vadd.f32 %v311_v12, %v310_v7  ;;  %v1074_v11 = vld [vmem:[%s1490_s5 + $0x48] sm:$0xff]   ;;  %v1075_v12 = vld [vmem:[%s1490_s5 + $0x40] sm:$0xff]  }
 0x10c   :  { %v320_v22 = vadd.f32 %v319_v18, %v318_v14  ;;  %v335_v23 = vrot.slane %v334_v19, 2  ;;  %v329_v24 = vadd.f32 %v328_v17, %v327_v13  ;;  %v313_v29 = vrot.slane %v312_v21, 1 }
 0x10e   :  { %v321_v25 = vrot.slane %v320_v22, 1  ;;  %v336_v26 = vadd.f32 %v335_v23, %v334_v19  ;;  %v330_v28 = vrot.slane %v329_v24, 1  ;;  %v314_v34 = vadd.f32 %v313_v29, %v312_v21  ;;  %v582_v29 = vld [vmem:[%s1492_s6 + $0x28] sm:$0xff] }
 0x110   :  { %v337_v30 = vrot.slane %v336_v26, 1  ;;  %v331_v31 = vadd.f32 %v330_v28, %v329_v24  ;;  %v322_v32 = vadd.f32 %v321_v25, %v320_v22  ;;  %v583_v28 = vld [vmem:[%s1492_s6 + $0x30] sm:$0xff] }
 0x112   :  { %v338_v33 = vadd.f32 %v337_v30, %v336_v26  ;;  %v342_v36 = vsel %vm341_vm3, %v314_v34, %v331_v31  ;;  %v581_v30 = vld [vmem:[%s1492_s6 + $0x20] sm:$0xff]  ;;  %v580_v31 = vld [vmem:[%s1492_s6 + $0x18] sm:$0xff] }
 0x113   :  { %v577_v34 = vld [vmem:[%s1492_s6] sm:$0xff] }
 0x114   :  { %v343_v35 = vsel %vm341_vm3, %v322_v32, %v338_v33  ;;  %v579_v32 = vld [vmem:[%s1492_s6 + $0x10] sm:$0xff]  ;;  %v578_v33 = vld [vmem:[%s1492_s6 + $0x8] sm:$0xff] }
 0x115   :  { %953 = vmatprep.mubr.msk.f32.mxu1 %vm344_vm4, %v343_v35 }
 0x116   :  { %417 = vmatmul.mubr.f32.vlgmr.msra.gmra.mxu1 %v342_v36 }
 0x117   :  { %672 = vmatpush1.bf16.msra.mxu1 %v1063_v40 }
 0x118   :  { %673 = vmatprep.subr.bf16.mxu1 %v1081_v39 }
 0x11b   :  { %674 = vmatpush1.bf16.msra.mxu1 %v1064_v41 }
 0x11c   :  { %675 = vmatprep.subr.bf16.mxu1 %v1081_v39 }
 0x11f   :  { %676 = vmatpush1.bf16.msra.mxu1 %v1065_v42 }
 0x120   :  { %677 = vmatprep.subr.bf16.mxu1 %v1081_v39 }
 0x123   :  { %678 = vmatpush1.bf16.msra.mxu1 %v1066_v43 }
 0x124   :  { %679 = vmatprep.subr.bf16.mxu1 %v1081_v39 }
 0x127   :  { %680 = vmatpush1.bf16.msra.mxu1 %v1067_v44 }
 0x128   :  { %681 = vmatprep.subr.bf16.mxu1 %v1081_v39 }
 0x12b   :  { %682 = vmatpush1.bf16.msra.mxu1 %v1068_v45 }
 0x12c   :  { %683 = vmatprep.subr.bf16.mxu1 %v1081_v39 }
 0x12f   :  { %684 = vmatpush1.bf16.msra.mxu1 %v1069_v46 }
 0x130   :  { %685 = vmatprep.subr.bf16.mxu1 %v1081_v39 }
 0x133   :  { %686 = vmatpush1.bf16.msra.mxu1 %v1070_v47 }
 0x134   :  { %693 = vmatprep.subr.bf16.mxu1 %v1081_v39 }
 0x137   :  { %694 = vmatpush2.bf16.msra.mxu1 %v669_v49 }
 0x138   :  { %695 = vmatprep.subr.bf16.mxu1 %v1081_v39 }
 0x13b   :  { %696 = vmatpush2.bf16.msra.mxu1 %v1072_v50 }
 0x13c   :  { %697 = vmatprep.subr.bf16.mxu1 %v1081_v39 }
 0x13f   :  { %698 = vmatpush2.bf16.msra.mxu1 %v1073_v10 }
 0x140   :  { %699 = vmatprep.subr.bf16.mxu1 %v1081_v39 }
 0x143   :  { %700 = vmatpush2.bf16.msra.mxu1 %v1074_v11 }
 0x144   :  { %701 = vmatprep.subr.bf16.mxu1 %v1081_v39 }
 0x147   :  { %702 = vmatpush2.bf16.msra.mxu1 %v1075_v12 }
 0x1d6   :  { %v418_v51 = vpop.f32.mrf.mxu1 }
 0x1d7   :  { %v422_v52 = vmul.f32 0.010204081, %v418_v51 }
 0x1d8   :  { %v420_v53 = vpop.f32.mrf.mxu1 }
 0x1d9   :  { %v423_v54 = vmul.f32 %v422_v52, %v422_v52 }
 0x1db   :  { %v425_v55 = vrot.slane %v423_v54, 7 }
 0x1dd   :  { %v427_v56 = vsub.f32 %v422_v52, %v425_v55  ;;  %v586_v55 = vld [vmem:[%s1493_s7] sm:$0xff] }
 0x1df   :  { %v428_v57 = vmax.f32 %v427_v56, 0.0 }
 0x1e1   :  { %v429_v58 = vadd.f32 1e-05, %v428_v57 }
 0x1e3   :  { %1076 = vrsqrt.f32 %v429_v58 }
 0x1f0   :  { %v1077_v59 = vpop.eup %1076 }
 0x1f1   :  { %v432_v61 = vrot.slane %v1077_v59, 1 }
 0x1f3   :  { %v434_v63 = vmul.f32 %v432_v61, %v92_v60 }
 0x1f5   :  { %v435_v0 = vmul.f32 %v434_v63, %v422_v52  ;;  %v443_v7 = vrot.slane %v434_v63, %v1401_v2 }
 0x1f7   :  { %v437_v5 = vrot.slane %v435_v0, 7 }
 0x1f9   :  { %v439_v6 = vsub.f32 %v92_v60, %v437_v5 }
 0x1fb   :  { %v447_v8 = vrot.slane %v439_v6, %v1404_v4  ;;  %v587_v6 = vld [vmem:[%s1494_s8] sm:$0x3] }
 0x1fd   :  { %v448_v9 = vsel %vm341_vm3, %v443_v7, %v447_v8 }
 0x1fe   :  { %956 = vmatmul.mubr.msk.f32.vlgmr.msra.gmra.mxu0 %vm451_vm5, %v448_v9 }
 0x1ff   :  { %1003 = vmatprep.mubr.msk.f32.mxu0 %vm1082_vm6, %v1080_v1 }
 0x2be   :  { %v525_v13 = vpop.f32.mrf.mxu0 }
 0x2bf   :  { %v533_v14 = vrot.slane %v525_v13, %v1401_v2  ;;  %v543_v17 = vrot.slane %v525_v13, %v1404_v4 }
 0x2c0   :  { %v527_v15 = vpop.f32.mrf.mxu0 }
 0x2c1   :  { %v538_v16 = vmul.f32 %v533_v14, %v1340_v62  ;;  %v537_v18 = vrot.slane %v527_v15, %v1401_v2  ;;  %v547_v21 = vrot.slane %v527_v15, %v1404_v4  ;;  %v585_v62 = vld [vmem:[%s1492_s6 + $0x40] sm:$0xff] }
 0x2c2   :  { %986 = vmatpush3.msra.mxu0 %v585_v62 }
 0x2c3   :  { %v548_v19 = vadd.f32 %v543_v17, %v538_v16  ;;  %v539_v20 = vmul.f32 %v537_v18, %v1346_v3  ;;  %987 = vmatprep.subr.mxu0 %v1080_v1  ;;  %v584_v3 = vld [vmem:[%s1492_s6 + $0x38] sm:$0xff] }
 0x2c4   :  { %988 = vmatpush3.msra.mxu0 %v584_v3 }
 0x2c5   :  { %v549_v22 = vadd.f32 %v547_v21, %v539_v20  ;;  %v550_v23 = vmax.f32 %v548_v19, 0.0  ;;  %989 = vmatprep.subr.mxu0 %v1080_v1 }
 0x2c6   :  { %990 = vmatpush3.msra.mxu0 %v583_v28 }
 0x2c7   :  { %v551_v24 = vmax.f32 %v549_v22, 0.0  ;;  %v588_v26 = vpack.c.bf16 %v550_v23, %v550_v23  ;;  %991 = vmatprep.subr.mxu0 %v1080_v1 }
 0x2c8   :  { %992 = vmatpush3.msra.mxu0 %v582_v29 }
 0x2c9   :  { %v589_v25 = vpack.c.bf16 %v551_v24, %v551_v24  ;;  %993 = vmatprep.subr.mxu0 %v1080_v1 }
 0x2ca   :  { %994 = vmatpush3.msra.mxu0 %v581_v30 }
 0x2cb   :  { %970 = vmatprep.mubr.msk.bf16.mxu1 %vm344_vm4, %v589_v25  ;;  %995 = vmatprep.subr.mxu0 %v1080_v1 }
 0x2cc   :  { %704 = vmatmul.mubr.bf16.vlgmr.msra.gmra.mxu1 %v588_v26  ;;  %996 = vmatpush3.msra.mxu0 %v580_v31 }
 0x2cd   :  { %997 = vmatprep.subr.mxu0 %v1080_v1 }
 0x2ce   :  { %998 = vmatpush3.msra.mxu0 %v579_v32 }
 0x2cf   :  { %999 = vmatprep.subr.mxu0 %v1080_v1 }
 0x2d0   :  { %1000 = vmatpush3.msra.mxu0 %v578_v33 }
 0x2d1   :  { %1001 = vmatprep.subr.mxu0 %v1080_v1 }
 0x2d2   :  { %1002 = vmatpush3.msra.mxu0 %v577_v34 }
 0x2d3   :  { %1006 = vmatprep.subr.mxu0 %v1080_v1 }
 0x38c   :  { %v705_v35 = vpop.f32.mrf.mxu1 }
 0x38d   :  { %v712_v36 = vsel %vm711_vm7, %v705_v35, 0.0  ;;  %v719_v37 = vmul.f32 %v705_v35, %v705_v35 }
 0x38e   :  { %v713_v38 = vrot.slane %v712_v36, 4  ;;  %v707_v39 = vpop.f32.mrf.mxu1 }
 0x38f   :  { %v720_v40 = vsel %vm711_vm7, %v719_v37, 0.0 }
 0x390   :  { %v714_v41 = vadd.f32 %v713_v38, %v712_v36  ;;  %v721_v42 = vrot.slane %v720_v40, 4  ;;  %v708_v43 = vpop.f32.mrf.mxu1 }
 0x392   :  { %v715_v44 = vrot.slane %v714_v41, 2  ;;  %v722_v45 = vadd.f32 %v721_v42, %v720_v40  ;;  %v709_v46 = vpop.f32.mrf.mxu1 }
 0x394   :  { %v716_v47 = vadd.f32 %v715_v44, %v714_v41  ;;  %v723_v48 = vrot.slane %v722_v45, 2 }
 0x396   :  { %v717_v49 = vrot.slane %v716_v47, 1  ;;  %v724_v50 = vadd.f32 %v723_v48, %v722_v45 }
 0x398   :  { %v725_v51 = vrot.slane %v724_v50, 1  ;;  %v718_v52 = vadd.f32 %v717_v49, %v716_v47 }
 0x39a   :  { %v726_v53 = vadd.f32 %v725_v51, %v724_v50 }
 0x39c   :  { %v727_v54 = vsel %vm341_vm3, %v718_v52, %v726_v53 }
 0x39d   :  { %1004 = vmatmul.mubr.msk.f32.vlgmr.msra.gmra.mxu0 %vm728_vm8, %v727_v54 }
 0x39e   :  { %1008 = vmatprep.mubr.msk.f32.mxu0 %vm1082_vm6, %v1080_v1  ;;  %1007 = vmatpush3.msra.mxu0 %v586_v55 }
 0x45d   :  { %v798_v56 = vpop.f32.mrf.mxu0 }
 0x45e   :  { %v802_v57 = vmul.f32 0.055555556, %v798_v56 }
 0x45f   :  { %v1005_v58 = vpop.f32.mrf.mxu0 }
 0x460   :  { %v803_v59 = vmul.f32 %v802_v57, %v802_v57 }
 0x462   :  { %v805_v60 = vrot.slane %v803_v59, 7 }
 0x464   :  { %v807_v61 = vsub.f32 %v802_v57, %v805_v60 }
 0x466   :  { %v808_v63 = vmax.f32 %v807_v61, 0.0 }
 0x468   :  { %v809_v0 = vadd.f32 1e-05, %v808_v63 }
 0x46a   :  { %1078 = vrsqrt.f32 %v809_v0 }
 0x477   :  { %v1079_v5 = vpop.eup %1078 }
 0x478   :  { %v812_v1 = vrot.slane %v1079_v5, 1 }
 0x47a   :  { %v814_v7 = vmul.f32 %v812_v1, %v587_v6 }
 0x47c   :  { %v815_v8 = vmul.f32 %v814_v7, %v802_v57  ;;  %v823_v11 = vrot.slane %v814_v7, %v1401_v2 }
 0x47e   :  { %v817_v9 = vrot.slane %v815_v8, 7 }
 0x480   :  { %v819_v10 = vsub.f32 %v587_v6, %v817_v9 }
 0x482   :  { %v827_v12 = vrot.slane %v819_v10, %v1404_v4 }
 0x484   :  { %v828_v13 = vsel %vm341_vm3, %v823_v11, %v827_v12 }
 0x485   :  { %1009 = vmatmul.mubr.msk.f32.vlgmr.msra.gmra.mxu0 %vm829_vm9, %v828_v13 }
 0x545   :  { %v899_v14 = vpop.f32.mrf.mxu0 }
 0x546   :  { %v906_v15 = vrot.slane %v899_v14, %v1401_v2  ;;  %v911_v18 = vrot.slane %v899_v14, %v1404_v4 }
 0x547   :  { %v1010_v16 = vpop.f32.mrf.mxu0 }
 0x548   :  { %v907_v17 = vmul.f32 %v906_v15, %v705_v35 }
 0x54a   :  { %v912_v19 = vadd.f32 %v911_v18, %v907_v17 }
 0x54c   :  { %v913_v20 = vmax.f32 %v912_v19, 0.0 }
 0x54e   :  { %914 = vst.msk [vmem:[%s1495_s9] sm:$0x3] %vm711_vm7, %v913_v20 }

</bundles_post_ra>
